<compile_context>
chip_gen: v7x
topology: tpu7x:2x2x1
jax: 0.10.0
libtpu: 0.0.40
codegen_flags: <defaults>
</compile_context>

<pallas_src>
import jax
import jax.numpy as jnp
from jax.experimental import pallas as pl
from jax.experimental.pallas import tpu as pltpu

LANE = 128  # lane padding for an unmasked (lane-dense) output store


def _gnn_kernel(a_ref, x_ref, w1_ref, bw_ref, b2_ref, o_ref):
    a = a_ref[...]          # (N, N) bf16  (cast upstream)
    x = x_ref[...]          # (N, F) bf16
    w1 = w1_ref[...]        # (F, H) bf16
    bw = bw_ref[...]        # (2, H) f32: row 0 = b1, row 1 = W2^T
    b1 = bw[0:1, :]         # (1, H)
    w2t = bw[1:2, :]        # (1, H)

    f_dim = x.shape[1]
    h_dim = w1.shape[1]

    # --- GCNConv 1: Â X W1 + b1, then ReLU ---
    # Associate so the N^2 aggregation contracts against min(F, H).
    if f_dim <= h_dim:
        ax = jnp.dot(a, x, preferred_element_type=jnp.float32)              # (N, F) f32
        h = jnp.dot(ax.astype(jnp.bfloat16), w1,
                    preferred_element_type=jnp.float32)                     # (N, H) f32
    else:
        xw = jnp.dot(x, w1, preferred_element_type=jnp.float32)             # (N, H) f32
        h = jnp.dot(a, xw.astype(jnp.bfloat16),
                    preferred_element_type=jnp.float32)                     # (N, H) f32
    h = jnp.maximum(h + b1, 0.0)

    # --- GCNConv 2, reassociated: Â (h W2) + b2 ---
    # out_dim == 1 => h @ W2 is a VPU multiply + lane reduction (no MXU pass),
    # and the N^2 aggregation contracts against a single column.
    z = jnp.sum(h * w2t, axis=-1, keepdims=True)                            # (N, 1) f32
    out = jnp.dot(a, z.astype(jnp.bfloat16),
                  preferred_element_type=jnp.float32)                       # (N, 1) f32
    out = out + b2_ref[0, 0]                                                # scalar bias (SMEM)

    # Lane-dense writeback: broadcast the single column across 128 lanes so the
    # store is an unmasked full-vreg vst; the wrapper slices column 0.
    o_ref[...] = jnp.broadcast_to(out, o_ref.shape)


def heuristic_gnn_forward(a_norm, x, w1, b1, w2, b2, *, vmem_limit_bytes=None):
    n = x.shape[0]
    out_dim = w2.shape[1]
    assert out_dim == 1, "HeuristicGNN's second GCNConv has out_dim == 1"

    # bf16 MXU operands prepared upstream (halves HBM->VMEM bytes for Â).
    a_bf16 = a_norm.astype(jnp.bfloat16)
    x_bf16 = x.astype(jnp.bfloat16)
    w1_bf16 = w1.astype(jnp.bfloat16)
    # Merge the two 1-row f32 operands into a single (2, H) DMA.
    bw = jnp.concatenate(
        [b1.reshape(1, -1), w2.reshape(1, -1)], axis=0).astype(jnp.float32)
    b2_smem = b2.reshape(1, 1).astype(jnp.float32)

    if vmem_limit_bytes is None:
        # Single-buffered operands + padded output, plus slack for compiler temps.
        in_bytes = (a_bf16.size * 2 + x_bf16.size * 2 + w1_bf16.size * 2
                    + bw.size * 4)
        out_bytes = n * LANE * 4
        vmem_limit_bytes = max(16 << 20,
                               int(1.5 * (in_bytes + out_bytes)) + (2 << 20))

    vmem = pl.BlockSpec(memory_space=pltpu.MemorySpace.VMEM)
    smem = pl.BlockSpec(memory_space=pltpu.MemorySpace.SMEM)

    out_padded = pl.pallas_call(
        _gnn_kernel,
        out_shape=jax.ShapeDtypeStruct((n, LANE), jnp.float32),
        in_specs=[vmem, vmem, vmem, vmem, smem],
        out_specs=vmem,
        compiler_params=pltpu.CompilerParams(
            vmem_limit_bytes=vmem_limit_bytes),
    )(a_bf16, x_bf16, w1_bf16, bw, b2_smem)

    return out_padded[:, :out_dim]


def build_normalized_adjacency(edge_index, num_nodes):
    """Dense Â = D^{-1/2} (A + I) D^{-1/2}, matching PyG gcn_norm.

    Uses add_remaining_self_loops semantics: a self-loop is added only for
    nodes whose diagonal entry is still zero (existing self-loops keep their
    accumulated weight). Duplicate directed edges accumulate weight, matching
    sum-aggregation over a raw (uncoalesced) edge_index.
    """
    src = edge_index[0]
    dst = edge_index[1]
    a = jnp.zeros((num_nodes, num_nodes), jnp.float32)
    a = a.at[dst, src].add(1.0)          # message flows src -> dst
    diag = jnp.diag(a)
    a = a + jnp.diag(jnp.where(diag > 0, 0.0, 1.0))
    deg = a.sum(axis=1)
    d_inv_sqrt = jnp.where(deg > 0, 1.0 / jnp.sqrt(deg), 0.0)
    return d_inv_sqrt[:, None] * a * d_inv_sqrt[None, :]


def reference_forward_f32(a_norm, x, w1, b1, w2, b2):
    """Pure f32 reference matching the original PyTorch module's math."""
    h = jnp.maximum(a_norm @ x @ w1 + b1.reshape(1, -1), 0.0)
    return a_norm @ h @ w2 + b2.reshape(1, 1)


def reference_forward_bf16(a_norm, x, w1, b1, w2, b2):
    """Reference mirroring the kernel's numerics (bf16 MXU operands, f32 acc,
    chosen associations) for a tight correctness check."""
    bf = jnp.bfloat16
    a_b, x_b, w1_b = a_norm.astype(bf), x.astype(bf), w1.astype(bf)
    if x.shape[1] <= w1.shape[1]:
        ax = jnp.dot(a_b, x_b, preferred_element_type=jnp.float32)
        h = jnp.dot(ax.astype(bf), w1_b, preferred_element_type=jnp.float32)
    else:
        xw = jnp.dot(x_b, w1_b, preferred_element_type=jnp.float32)
        h = jnp.dot(a_b, xw.astype(bf), preferred_element_type=jnp.float32)
    h = jnp.maximum(h + b1.reshape(1, -1), 0.0)
    z = jnp.sum(h * w2.reshape(1, -1).astype(jnp.float32), axis=-1, keepdims=True)
    out = jnp.dot(a_b, z.astype(bf), preferred_element_type=jnp.float32)
    return out + b2.reshape(1, 1)


if __name__ == "__main__":
    key = jax.random.PRNGKey(0)
    num_nodes = 16
    input_dim = 16
    hidden_dim = 32
    num_edges = 40

    k_x, k_e1, k_e2, k_w1, k_w2 = jax.random.split(key, 5)

    # Node features and a random directed edge list (2, E).
    x = jax.random.normal(k_x, (num_nodes, input_dim), dtype=jnp.float32)
    edge_index = jnp.stack([
        jax.random.randint(k_e1, (num_edges,), 0, num_nodes),
        jax.random.randint(k_e2, (num_edges,), 0, num_nodes),
    ], axis=0)

    # Deterministic parameter init (glorot-uniform-ish), matching GCNConv shapes:
    #   conv1: W1 (input_dim, hidden_dim), b1 (hidden_dim,)
    #   conv2: W2 (hidden_dim, 1),         b2 (1,)
    lim1 = (6.0 / (input_dim + hidden_dim)) ** 0.5
    lim2 = (6.0 / (hidden_dim + 1)) ** 0.5
    w1 = jax.random.uniform(k_w1, (input_dim, hidden_dim), jnp.float32, -lim1, lim1)
    b1 = jnp.zeros((1, hidden_dim), jnp.float32)
    w2 = jax.random.uniform(k_w2, (hidden_dim, 1), jnp.float32, -lim2, lim2)
    b2 = jnp.zeros((1, 1), jnp.float32)

    a_norm = build_normalized_adjacency(edge_index, num_nodes)

    out = heuristic_gnn_forward(a_norm, x, w1, b1, w2, b2)
    out = jax.block_until_ready(out)
    assert out.shape == (num_nodes, 1)

    # Tight check against a reference mirroring the kernel's bf16/f32 numerics.
    ref_bf16 = reference_forward_bf16(a_norm, x, w1, b1, w2, b2)
    assert jnp.allclose(out, ref_bf16, atol=5e-3, rtol=5e-3)

    # Sanity check against the pure-f32 module semantics (bf16 MXU rounding only).
    ref_f32 = reference_forward_f32(a_norm, x, w1, b1, w2, b2)
    assert jnp.allclose(out, ref_f32, atol=1e-1, rtol=1e-1)

    print("KERNEL_OK")
</pallas_src>

<mosaic_0001>
module attributes {stable_mosaic.version = 11 : i64} {
  func.func @_gnn_kernel(%arg0: memref<16x16xbf16, #tpu.memory_space<vmem>>, %arg1: memref<16x16xbf16, #tpu.memory_space<vmem>>, %arg2: memref<16x32xbf16, #tpu.memory_space<vmem>>, %arg3: memref<2x32xf32, #tpu.memory_space<vmem>>, %arg4: memref<1x1xf32, #tpu.memory_space<smem>>, %arg5: memref<16x128xf32, #tpu.memory_space<vmem>>) attributes {dimension_semantics = [], scalar_prefetch = 0 : i64, scratch_operands = 0 : i64, tpu.core_type = #tpu.core_type<tc>} {
    %c0 = arith.constant 0 : index
    %c0_0 = arith.constant 0 : index
    %0 = vector.load %arg0[%c0, %c0_0] : memref<16x16xbf16, #tpu.memory_space<vmem>>, vector<16x16xbf16>
    %c0_1 = arith.constant 0 : index
    %c0_2 = arith.constant 0 : index
    %1 = vector.load %arg1[%c0_1, %c0_2] : memref<16x16xbf16, #tpu.memory_space<vmem>>, vector<16x16xbf16>
    %c0_3 = arith.constant 0 : index
    %c0_4 = arith.constant 0 : index
    %2 = vector.load %arg2[%c0_3, %c0_4] : memref<16x32xbf16, #tpu.memory_space<vmem>>, vector<16x32xbf16>
    %c0_5 = arith.constant 0 : index
    %c0_6 = arith.constant 0 : index
    %3 = vector.load %arg3[%c0_5, %c0_6] : memref<2x32xf32, #tpu.memory_space<vmem>>, vector<2x32xf32>
    %4 = vector.extract_strided_slice %3 {offsets = [0, 0], sizes = [1, 32], strides = [1, 1]} : vector<2x32xf32> to vector<1x32xf32>
    %5 = vector.extract_strided_slice %3 {offsets = [1, 0], sizes = [1, 32], strides = [1, 1]} : vector<2x32xf32> to vector<1x32xf32>
    %cst = arith.constant dense<0.000000e+00> : vector<16x16xf32>
    %6 = tpu.matmul %0, %1, %cst {dimension_numbers = #tpu.dot_dimension_numbers<[1], [0], [0], [1], [0, 0, 1, 1], [], []>} : vector<16x16xbf16>, vector<16x16xbf16>, vector<16x16xf32> -> vector<16x16xf32>
    %7 = arith.truncf %6 : vector<16x16xf32> to vector<16x16xbf16>
    %cst_7 = arith.constant dense<0.000000e+00> : vector<16x32xf32>
    %8 = tpu.matmul %7, %2, %cst_7 {dimension_numbers = #tpu.dot_dimension_numbers<[1], [0], [0], [1], [0, 0, 1, 1], [], []>} : vector<16x16xbf16>, vector<16x32xbf16>, vector<16x32xf32> -> vector<16x32xf32>
    %9 = vector.broadcast %4 : vector<1x32xf32> to vector<16x32xf32>
    %10 = arith.addf %8, %9 : vector<16x32xf32>
    %cst_8 = arith.constant 0.000000e+00 : f32
    %11 = vector.broadcast %cst_8 : f32 to vector<16x32xf32>
    %12 = arith.maximumf %10, %11 : vector<16x32xf32>
    %13 = vector.broadcast %5 : vector<1x32xf32> to vector<16x32xf32>
    %14 = arith.mulf %12, %13 : vector<16x32xf32>
    %cst_9 = arith.constant dense<0.000000e+00> : vector<16xf32>
    %15 = vector.multi_reduction <add>, %14, %cst_9 [1] : vector<16x32xf32> to vector<16xf32>
    %16 = vector.shape_cast %15 : vector<16xf32> to vector<16x1xf32>
    %17 = arith.truncf %16 : vector<16x1xf32> to vector<16x1xbf16>
    %cst_10 = arith.constant dense<0.000000e+00> : vector<16x1xf32>
    %18 = tpu.matmul %0, %17, %cst_10 {dimension_numbers = #tpu.dot_dimension_numbers<[1], [0], [0], [1], [0, 0, 1, 1], [], []>} : vector<16x16xbf16>, vector<16x1xbf16>, vector<16x1xf32> -> vector<16x1xf32>
    %c0_11 = arith.constant 0 : index
    %c0_12 = arith.constant 0 : index
    %19 = memref.load %arg4[%c0_11, %c0_12] : memref<1x1xf32, #tpu.memory_space<smem>>
    %20 = vector.broadcast %19 : f32 to vector<16x1xf32>
    %21 = arith.addf %18, %20 : vector<16x1xf32>
    %22 = vector.shape_cast %21 : vector<16x1xf32> to vector<16x1xf32>
    %23 = vector.broadcast %22 : vector<16x1xf32> to vector<16x128xf32>
    %c0_13 = arith.constant 0 : index
    %c0_14 = arith.constant 0 : index
    %24 = vector.load %arg5[%c0_13, %c0_14] : memref<16x128xf32, #tpu.memory_space<vmem>>, vector<16x128xf32>
    tpu.vector_store %arg5[%c0_13, %c0_14], %23 {strides = array<i32>} : memref<16x128xf32, #tpu.memory_space<vmem>>, vector<16x128xf32>,
    return
  }
}

</mosaic_0001>

<bundles_post_ra>
// kernel: tpu_custom_call.1
= control target key start
LH: loop header
LB: loop body
LE: loop exit
PB: predicated region body
PF: predicated region fallthrough
CT: control target
= control target key end

     0   :  { %11 = vsyncpa [#allocation4], 0  ;;  %s463_s0 = inlined_call_operand.hbm [shape: bf16[16,16], index: 0, kind: input, shape index: {}]   ;;  %s464_s1 = inlined_call_operand.hbm [shape: bf16[16,16], index: 1, kind: input, shape index: {}]   ;;  %s465_s2 = inlined_call_operand.vmem [shape: bf16[16,32], index: 2, kind: input, shape index: {}]   ;;  %s466_s3 = inlined_call_operand.vmem [shape: f32[2,32], index: 3, kind: input, shape index: {}]   ;;  %s467_s4 = inlined_call_operand.<no memory space> [shape: f32[1,1], index: 4, kind: input, shape index: {}]   ;;  %s468_s5 = inlined_call_operand.hbm [shape: f32[16,128], index: 5, kind: output, shape index: {}]  }
   0x1   :  { %12 = vsyncpa [#allocation7], 0 }
   0x2   :  { %13 = vsyncpa [#allocation5], 0  ;;  %s375_s18 = smov [#allocation3]   ;;  %s303_s22 = scalar_lea.hbm %s463_s0, 128 }
   0x3   :  { %s19_s19 = sshll.u32 %s375_s18, 4  ;;  %p304_p0 = scmp.ne.s32.totalorder %s463_s0, %s303_s22  ;;  %s20_s19 = int_to_ptr.vmem [resolvable:$true] %s19_s19 }
   0x4   :  { %p307_p1 = scmp.lt.u32.totalorder %s303_s22, %s463_s0 }
   0x6   :  { %p309_p2 = pnand %p307_p1, %p304_p0 }
   0x8   :  { %312 = shalt.err (!%p309_p2)
}
   0x9   :  { %s313_s27 = scalar_lea.vmem %s20_s19, 128  ;;  %p318_p4 = scmp.lt.s32.totalorder %s20_s19, %s20_s19 }
   0xa   :  { %p314_p3 = scmp.ne.s32.totalorder %s20_s19, %s313_s27  ;;  %p319_p5 = scmp.lt.s32.totalorder %s313_s27, %s313_s27 }
   0xc   :  { %p320_p6 = por %p319_p5, %p318_p4 }
   0xe   :  { %p321_p7 = pnand %p320_p6, %p314_p3 }
  0x10   :  { %324 = shalt.err (!%p321_p7)
}
  0x11   :  { %s376_s28 = smov 64   ;;  %s377_s29 = smov 4  }
  0x12   :  { %25 = dma.hbm_to_vmem [thread:$0]  %s463_s0, 128, %s20_s19, [#allocation4], %s376_s28, %s376_s28, %s377_s29  }
  0x13   :  { %s378_s7 = smov [#allocation6]   ;;  %s325_s11 = scalar_lea.hbm %s464_s1, 128 }
  0x14   :  { %s31_s8 = sshll.u32 %s378_s7, 4  ;;  %p326_p8 = scmp.ne.s32.totalorder %s464_s1, %s325_s11  ;;  %s32_s8 = int_to_ptr.vmem [resolvable:$true] %s31_s8 }
  0x15   :  { %p329_p9 = scmp.lt.u32.totalorder %s325_s11, %s464_s1 }
  0x17   :  { %p331_p10 = pnand %p329_p9, %p326_p8 }
  0x19   :  { %334 = shalt.err (!%p331_p10)
}
  0x1a   :  { %s335_s16 = scalar_lea.vmem %s32_s8, 128  ;;  %p340_p12 = scmp.lt.s32.totalorder %s32_s8, %s32_s8 }
  0x1b   :  { %p336_p11 = scmp.ne.s32.totalorder %s32_s8, %s335_s16  ;;  %p341_p13 = scmp.lt.s32.totalorder %s335_s16, %s335_s16 }
  0x1d   :  { %p342_p0 = por %p341_p13, %p340_p12 }
  0x1f   :  { %p343_p1 = pnand %p342_p0, %p336_p11 }
  0x21   :  { %346 = shalt.err (!%p343_p1)
}
  0x22   :  { %37 = dma.hbm_to_vmem [thread:$0]  %s464_s1, 128, %s32_s8, [#allocation7], %s376_s28, %s376_s28, %s377_s29  }
  0x23   :  { %369 = dma.done.wait [#allocation4], 128  }
  0x24   :  { %370 = vsyncadd [#allocation4], 4294967168 }
  0x25   :  { %371 = dma.done.wait [#allocation7], 128  }
  0x26   :  { %372 = vsyncadd [#allocation7], 4294967168  ;;  %v379_v0 = vmov 0.0   ;;  %vm380_vm0 = vmmov 0   ;;  %v300_v1 = vld [vmem:[#allocation6] sm:$0xff]   ;;  %v301_v2 = vld [vmem:[#allocation3] sm:$0xff]   ;;  %v115_v9 = vlaneseq  ;;  %v186_v32 = vstv %s467_s4 }
  0x27   :  { %270 = vmatprep.subr.bf16.mxu0 %v379_v0  ;;  %272 = vmatprep.mubr.msk.bf16.mxu0 %vm380_vm0, %v379_v0  ;;  %vm69_vm1 = vcmask 130048   ;;  %v302_v3 = vld [vmem:[%s465_s2] sm:$0xff]   ;;  %vm177_vm2 = vcmask 261120   ;;  %v381_v31 = vmov 0   ;;  %s382_s21 = smov [#allocation8]  }
  0x28   :  { %276 = vmatprep.subr.bf16.mxu1 %v379_v0  ;;  %278 = vmatprep.mubr.msk.bf16.mxu1 %vm380_vm0, %v379_v0  ;;  %v116_v10 = vshrl.u32 %v115_v9, 7  ;;  %v57_v12 = vld [vmem:[%s466_s3] sm:$0x3]  ;;  %s245_s22 = sshll.u32 %s382_s21, 4  ;;  %s246_s22 = int_to_ptr.vmem [resolvable:$true] %s245_s22 }
  0x29   :  { %271 = vmatpush3.bf16.msra.mxu0 %v300_v1  ;;  %277 = vmatpush3.bf16.msra.mxu1 %v302_v3  ;;  %s347_s23 = scalar_lea.vmem %s246_s22, 256  ;;  %p352_p3 = scmp.lt.s32.totalorder %s246_s22, %s246_s22 }
  0x2a   :  { %282 = vmatprep.subr.bf16.mxu0 %v379_v0  ;;  %v117_v11 = vsub.s32 0, %v116_v10  ;;  %v173_v14 = vsub.s32 1, %v116_v10  ;;  %298 = vset.pattern.permute.xlu1 %v381_v31  ;;  %p348_p2 = scmp.ne.s32.totalorder %s246_s22, %s347_s23  ;;  %p353_p4 = scmp.lt.s32.totalorder %s347_s23, %s347_s23 }
  0x2b   :  { %299 = vset.pattern.permute.xlu0 %v381_v31 }
  0x2c   :  { %273 = vmatmul.mubr.msk.bf16.vlgmr.msra.gmra.mrb[0].mxu0 %vm69_vm1, %v301_v2  ;;  %v118_v13 = vrot.slane %v57_v12, %v117_v11  ;;  %v174_v18 = vrot.slane %v57_v12, %v173_v14  ;;  %p354_p5 = por %p353_p4, %p352_p3 }
  0x2d   :  { %284 = vmatprep.mubr.msk.bf16.mxu0 %vm380_vm0, %v379_v0 }
  0x2e   :  { %p355_p6 = pnand %p354_p5, %p348_p2 }
  0xff   :  { %v107_v4 = vpop.f32.mrb[0].mxu0 }
 0x100   :  { %v274_v5 = vpop.f32.mrb[1].mxu0 }
 0x101   :  { %v110_v6 = vpop.f32.mrb[2].mxu0 }
 0x102   :  { %v114_v7 = vpack.c.bf16 %v110_v6, %v107_v4  ;;  %v275_v8 = vpop.f32.mrb[3].mxu0 }
 0x104   :  { %279 = vmatmul.mubr.msk.bf16.vlgmr.msra.gmra.mrb[0].mxu1 %vm69_vm1, %v114_v7 }
 0x1d7   :  { %v162_v15 = vpop.f32.mrb[0].mxu1 }
 0x1d8   :  { %v163_v16 = vadd.f32 %v162_v15, %v118_v13  ;;  %v280_v17 = vpop.f32.mrb[1].mxu1 }
 0x1d9   :  { %v165_v19 = vpop.f32.mrb[2].mxu1 }
 0x1da   :  { %v169_v20 = vmax.f32 %v163_v16, 0.0  ;;  %v166_v21 = vadd.f32 %v165_v19, %v118_v13  ;;  %v281_v22 = vpop.f32.mrb[3].mxu1 }
 0x1dc   :  { %v170_v23 = vmax.f32 %v166_v21, 0.0  ;;  %v175_v24 = vmul.f32 %v174_v18, %v169_v20 }
 0x1de   :  { %v178_v25 = vsel %vm177_vm2, %v175_v24, 0.0  ;;  %v176_v26 = vmul.f32 %v174_v18, %v170_v23 }
 0x1df   :  { %179 = vadd.xlane.f32.xlu0 %v178_v25 }
 0x1e0   :  { %v181_v27 = vsel %vm177_vm2, %v176_v26, 0.0 }
 0x1e3   :  { %182 = vadd.xlane.f32.xlu0 %v181_v27 }
 0x26c   :  { %v180_v28 = vpop.xlane.xlu0 %179 }
 0x270   :  { %v183_v29 = vpop.xlane.xlu0 %182 }
 0x271   :  { %v184_v30 = vpack.c.bf16 %v183_v29, %v180_v28 }
 0x273   :  { %283 = vmatpush3.bf16.msra.mxu0 %v184_v30 }
 0x276   :  { %285 = vmatmul.mubr.msk.bf16.vlgmr.msra.gmra.mrb[4].mxu0 %vm69_vm1, %v301_v2 }
 0x349   :  { %v221_v33 = vpop.f32.mrb[4].mxu0 }
 0x34a   :  { %v222_v34 = vadd.f32 %v221_v33, %v186_v32  ;;  %v286_v35 = vpop.f32.mrb[5].mxu0 }
 0x34b   :  { %v224_v36 = vpop.f32.mrb[6].mxu0 }
 0x34c   :  { %230 = vperm.xlu1 %298, %v222_v34   ;;  %v287_v37 = vpop.f32.mrb[7].mxu0  ;;  %v225_v38 = vadd.f32 %v224_v36, %v186_v32 }
 0x350   :  { %235 = vperm.xlu1 %298, %v225_v38  }
 0x3cb   :  { %v231_v39 = vpop.permute.xlu1 %230 }
 0x3cc   :  { %238 = vst [vmem:[#allocation8] sm:$0xff] %v231_v39 }
 0x3cf   :  { %v236_v40 = vpop.permute.xlu1 %235 }
 0x3d0   :  { %239 = vst [vmem:[#allocation8 + $0x8] sm:$0xff] %v236_v40 }
 0x3d1   :  { %358 = shalt.err (!%p355_p6)
}
 0x3d2   :  { %s359_s25 = scalar_lea.hbm %s468_s5, 256 }
 0x3d3   :  { %p360_p7 = scmp.ne.s32.totalorder %s468_s5, %s359_s25  ;;  %p363_p8 = scmp.lt.u32.totalorder %s359_s25, %s468_s5 }
 0x3d5   :  { %p365_p9 = pnand %p363_p8, %p360_p7 }
 0x3d7   :  { %368 = shalt.err (!%p365_p9)
}
 0x3d8   :  { %s383_s30 = smov 128   ;;  %s384_s6 = smov 8  }
 0x3d9   :  { %251 = dma.vmem_to_hbm [thread:$0]  %s246_s22, 256, %s468_s5, [#allocation5], %s383_s30, %s383_s30, %s384_s6  }
 0x3da   :  { %373 = dma.done.wait [#allocation5], 256  }
 0x3db   :  { %374 = vsyncadd [#allocation5], 4294967040 }
 0x3dc   :  { %255 = vsyncpa [#allocation4], 1 }
 0x3dd   :  { %256 = vsyncpa [#allocation7], 1 }
 0x3de   :  { %257 = vsyncpa [#allocation5], 1 }

</bundles_post_ra>
